<compile_context>
chip_gen: v7x
topology: tpu7x:2x2x1
jax: 0.10.0
libtpu: 0.0.40
codegen_flags: <defaults>
</compile_context>

<pallas_src>
import math
import functools

import jax
import jax.numpy as jnp
from jax.experimental import pallas as pl
from jax.experimental.pallas import tpu as pltpu

_LANES = 128
_SUBLANES = 8
_TARGET_TILE_BYTES = 2 * 1024 * 1024   # per output tile (x2 for double buffering)
_VMEM_LIMIT_BYTES = 32 * 1024 * 1024   # safe on v5e/v6e/v7x
_MIN_GRID_STEPS = 4                    # megacore sharding + pipelining headroom


def _round_up(x, m):
    return -(-x // m) * m


def _pe_kernel_packed(x_ref, freq_ref, off_ref, o_ref, *, d, p):
    """Lane-packed path: one (tile_r, 128) output block == (tile_r * p, d) row-major.

    x_ref:    (tile_r, p)  positions, p = 128 // d positions per output row
    freq_ref: (1, 128)     per-lane frequency ([f_sin | f_cos] pattern tiled p times,
                            granularity folded in)
    off_ref:  (1, 128)     per-lane phase offset (0 on sin lanes, pi/2 on cos lanes)
    o_ref:    (tile_r, 128)
    """
    x = x_ref[...]
    tile_r = o_ref.shape[0]
    lane = jax.lax.broadcasted_iota(jnp.int32, (1, _LANES), 1)
    # Expand each position to its d consecutive lanes: x_exp[:, l] = x[:, l // d].
    # Built from p exact lane-broadcast + select steps (VPU/XLU; MXU stays idle).
    # For tiny d (d <= 8 -> p >= 16) this costs more selects, but it is still far
    # cheaper than the old extra HBM transpose pass.
    x_exp = jnp.broadcast_to(x[:, 0:1], (tile_r, _LANES))
    for q in range(1, p):
        col = jnp.broadcast_to(x[:, q:q + 1], (tile_r, _LANES))
        x_exp = jnp.where(lane >= q * d, col, x_exp)
    # One pass: sin lanes get offset 0, cos lanes get pi/2 (cos(t) == sin(t + pi/2)).
    o_ref[...] = jnp.sin(x_exp * freq_ref[...] + off_ref[...])


def _pe_kernel_row(x_ref, freq_ref, off_ref, o_ref):
    """Row path: natural (tile_n, d) output (lane-dense/unmasked when d % 128 == 0).

    x_ref: (tile_n, 1), freq_ref/off_ref: (1, d), o_ref: (tile_n, d).
    Single full-width store; no concatenate.
    """
    o_ref[...] = jnp.sin(x_ref[...] * freq_ref[...] + off_ref[...])


def positional_encoding(x, out_channels, base_freq=1e-4, granularity=1.0):
    """JAX/Pallas equivalent of PositionalEncoding.forward.

    x: arbitrary-shaped array of positions -> (x.size, out_channels) float32.
    """
    if out_channels % 2 != 0:
        raise ValueError(
            f"Cannot use sinusoidal positional encoding with odd "
            f"'out_channels' (got {out_channels})."
        )
    d = out_channels
    half = d // 2

    # frequency = logspace(0, 1, half, base=base_freq); granularity folded in.
    exponents = jnp.linspace(0.0, 1.0, half, dtype=jnp.float32)
    frequency = jnp.power(jnp.float32(base_freq), exponents) / jnp.float32(granularity)

    x_flat = jnp.asarray(x, dtype=jnp.float32).reshape(-1)
    n = x_flat.shape[0]
    if n == 0:
        return jnp.zeros((0, d), jnp.float32)

    # [sin | cos] in one pass: phase offset pi/2 on the cos half.
    half_pi = jnp.float32(math.pi / 2.0)
    freq_row = jnp.concatenate([frequency, frequency])                     # (d,)
    off_row = jnp.concatenate(
        [jnp.zeros((half,), jnp.float32), jnp.full((half,), half_pi, jnp.float32)]
    )                                                                      # (d,)

    compiler_params = pltpu.CompilerParams(
        dimension_semantics=("parallel",),
        vmem_limit_bytes=_VMEM_LIMIT_BYTES,
    )
    # TODO(synk): if xprof shows exposed output writeback on v5e, add
    # pipeline_mode=pl.Buffered(3) to out_specs there (cheap on 128 MiB VMEM).

    if _LANES % d == 0:
        # Packed lane-dense path: (N, d) row-major == (N*d/128, 128) bit-identical.
        p = _LANES // d                         # positions per 128-lane output row
        n_rows = -(-n // p)
        tile_r = _TARGET_TILE_BYTES // (_LANES * 4)
        # >= _MIN_GRID_STEPS grid steps when the problem is big enough.
        tile_r = max(
            _SUBLANES,
            min(tile_r, _round_up(-(-n_rows // _MIN_GRID_STEPS), _SUBLANES)),
        )
        rows_pad = _round_up(max(n_rows, 1), tile_r)
        n_pad = rows_pad * p
        x_in = jnp.pad(x_flat, (0, n_pad - n)).reshape(rows_pad, p)
        freq_lane = jnp.tile(freq_row, p).reshape(1, _LANES)
        off_lane = jnp.tile(off_row, p).reshape(1, _LANES)

        out = pl.pallas_call(
            functools.partial(_pe_kernel_packed, d=d, p=p),
            out_shape=jax.ShapeDtypeStruct((rows_pad, _LANES), jnp.float32),
            grid=(rows_pad // tile_r,),
            in_specs=[
                pl.BlockSpec((tile_r, p), lambda i: (i, 0)),
                pl.BlockSpec((1, _LANES), lambda i: (0, 0)),
                pl.BlockSpec((1, _LANES), lambda i: (0, 0)),
            ],
            out_specs=pl.BlockSpec((tile_r, _LANES), lambda i: (i, 0)),
            compiler_params=compiler_params,
        )(x_in, freq_lane, off_lane)
        # Free row-major view back to (N, d): no transpose, no extra HBM pass.
        return out.reshape(rows_pad * p, d)[:n]

    # Row path: natural (N, d) layout. Fully lane-dense (unmasked stores) when
    # d % 128 == 0; also serves as the correct fallback for other even d.
    bytes_per_pos = d * 4
    tile_n = (_TARGET_TILE_BYTES // bytes_per_pos) // _SUBLANES * _SUBLANES
    tile_n = max(
        _SUBLANES,
        min(tile_n, _round_up(-(-n // _MIN_GRID_STEPS), _SUBLANES)),
    )
    n_pad = _round_up(n, tile_n)
    x_col = jnp.pad(x_flat, (0, n_pad - n)).reshape(n_pad, 1)
    freq_in = freq_row.reshape(1, d)
    off_in = off_row.reshape(1, d)

    out = pl.pallas_call(
        _pe_kernel_row,
        out_shape=jax.ShapeDtypeStruct((n_pad, d), jnp.float32),
        grid=(n_pad // tile_n,),
        in_specs=[
            pl.BlockSpec((tile_n, 1), lambda i: (i, 0)),
            pl.BlockSpec((1, d), lambda i: (0, 0)),
            pl.BlockSpec((1, d), lambda i: (0, 0)),
        ],
        out_specs=pl.BlockSpec((tile_n, d), lambda i: (i, 0)),
        compiler_params=compiler_params,
    )(x_col, freq_in, off_in)
    return out[:n]


def _reference(x, out_channels, base_freq=1e-4, granularity=1.0):
    """Pure-JAX mirror of the PyTorch module (cat([sin, cos], -1))."""
    half = out_channels // 2
    exponents = jnp.linspace(0.0, 1.0, half, dtype=jnp.float32)
    frequency = jnp.power(jnp.float32(base_freq), exponents)
    xg = jnp.asarray(x, jnp.float32).reshape(-1, 1)
    if granularity != 1.0:
        xg = xg / jnp.float32(granularity)
    phase = xg * frequency.reshape(1, -1)
    return jnp.concatenate([jnp.sin(phase), jnp.cos(phase)], axis=-1)


if __name__ == "__main__":
    key = jax.random.PRNGKey(0)
    n_positions = 8
    x = jax.random.uniform(
        key, (n_positions,), dtype=jnp.float32, minval=0.0, maxval=100.0
    )

    cases = [
        # (out_channels, base_freq, granularity)
        (32, 1e-4, 1.0),    # packed path, 4 positions per 128-lane row
        (32, 1e-4, 0.5),    # packed path + granularity folded into frequencies
        (128, 1e-4, 1.0),   # packed path, 1 position per 128-lane row
        (256, 1e-4, 1.0),   # row path (d % 128 == 0)
    ]
    for d, bf, g in cases:
        out = jax.block_until_ready(positional_encoding(x, d, bf, g))
        ref = _reference(x, d, bf, g)
        assert out.shape == (n_positions, d), f"bad shape for d={d}"
        # f32 trig argument reduction at |phase| up to ~200 plus the
        # cos(t) == sin(t + pi/2) identity differ from the two-pass sin/cos
        # reference by a few 1e-6 -> 1e-4 tolerance gives comfortable margin.
        assert jnp.allclose(out, ref, atol=1e-4, rtol=1e-4), f"mismatch for d={d}"

    print("KERNEL_OK")
</pallas_src>

<mosaic_0001>
module attributes {stable_mosaic.version = 11 : i64} {
  func.func @_pe_kernel_packed(%arg0: i32, %arg1: memref<8x4xf32, #tpu.memory_space<vmem>>, %arg2: memref<1x128xf32, #tpu.memory_space<vmem>>, %arg3: memref<1x128xf32, #tpu.memory_space<vmem>>, %arg4: memref<8x128xf32, #tpu.memory_space<vmem>>) attributes {dimension_semantics = [#tpu.dimension_semantics<parallel>], iteration_bounds = array<i64: 1>, scalar_prefetch = 0 : i64, scratch_operands = 0 : i64, tpu.core_type = #tpu.core_type<tc>, window_params = [{transform_indices = @transform_0, window_bounds = array<i64: 8, 4>}, {pipeline_mode = #tpu.pipeline_mode<synchronous>, transform_indices = @transform_1, window_bounds = array<i64: 1, 128>}, {pipeline_mode = #tpu.pipeline_mode<synchronous>, transform_indices = @transform_2, window_bounds = array<i64: 1, 128>}, {transform_indices = @transform_3, window_bounds = array<i64: 8, 128>}]} {
    %c0 = arith.constant 0 : index
    %c0_0 = arith.constant 0 : index
    %0 = vector.load %arg1[%c0, %c0_0] : memref<8x4xf32, #tpu.memory_space<vmem>>, vector<8x4xf32>
    %1 = tpu.iota {dimensions = array<i32: 1>} : vector<1x128xi32>
    %2 = vector.extract_strided_slice %0 {offsets = [0, 0], sizes = [8, 1], strides = [1, 1]} : vector<8x4xf32> to vector<8x1xf32>
    %3 = vector.shape_cast %2 : vector<8x1xf32> to vector<8x1xf32>
    %4 = vector.broadcast %3 : vector<8x1xf32> to vector<8x128xf32>
    %5 = vector.extract_strided_slice %0 {offsets = [0, 1], sizes = [8, 1], strides = [1, 1]} : vector<8x4xf32> to vector<8x1xf32>
    %6 = vector.shape_cast %5 : vector<8x1xf32> to vector<8x1xf32>
    %7 = vector.broadcast %6 : vector<8x1xf32> to vector<8x128xf32>
    %c32_i32 = arith.constant 32 : i32
    %8 = vector.broadcast %c32_i32 : i32 to vector<1x128xi32>
    %9 = arith.cmpi sge, %1, %8 : vector<1x128xi32>
    %10 = vector.shape_cast %9 : vector<1x128xi1> to vector<1x128xi1>
    %11 = vector.broadcast %10 : vector<1x128xi1> to vector<8x128xi1>
    %12 = arith.select %11, %7, %4 : vector<8x128xi1>, vector<8x128xf32>
    %13 = vector.extract_strided_slice %0 {offsets = [0, 2], sizes = [8, 1], strides = [1, 1]} : vector<8x4xf32> to vector<8x1xf32>
    %14 = vector.shape_cast %13 : vector<8x1xf32> to vector<8x1xf32>
    %15 = vector.broadcast %14 : vector<8x1xf32> to vector<8x128xf32>
    %c64_i32 = arith.constant 64 : i32
    %16 = vector.broadcast %c64_i32 : i32 to vector<1x128xi32>
    %17 = arith.cmpi sge, %1, %16 : vector<1x128xi32>
    %18 = vector.shape_cast %17 : vector<1x128xi1> to vector<1x128xi1>
    %19 = vector.broadcast %18 : vector<1x128xi1> to vector<8x128xi1>
    %20 = arith.select %19, %15, %12 : vector<8x128xi1>, vector<8x128xf32>
    %21 = vector.extract_strided_slice %0 {offsets = [0, 3], sizes = [8, 1], strides = [1, 1]} : vector<8x4xf32> to vector<8x1xf32>
    %22 = vector.shape_cast %21 : vector<8x1xf32> to vector<8x1xf32>
    %23 = vector.broadcast %22 : vector<8x1xf32> to vector<8x128xf32>
    %c96_i32 = arith.constant 96 : i32
    %24 = vector.broadcast %c96_i32 : i32 to vector<1x128xi32>
    %25 = arith.cmpi sge, %1, %24 : vector<1x128xi32>
    %26 = vector.shape_cast %25 : vector<1x128xi1> to vector<1x128xi1>
    %27 = vector.broadcast %26 : vector<1x128xi1> to vector<8x128xi1>
    %28 = arith.select %27, %23, %20 : vector<8x128xi1>, vector<8x128xf32>
    %c0_1 = arith.constant 0 : index
    %c0_2 = arith.constant 0 : index
    %29 = vector.load %arg2[%c0_1, %c0_2] : memref<1x128xf32, #tpu.memory_space<vmem>>, vector<1x128xf32>
    %30 = vector.broadcast %29 : vector<1x128xf32> to vector<8x128xf32>
    %31 = arith.mulf %28, %30 : vector<8x128xf32>
    %c0_3 = arith.constant 0 : index
    %c0_4 = arith.constant 0 : index
    %32 = vector.load %arg3[%c0_3, %c0_4] : memref<1x128xf32, #tpu.memory_space<vmem>>, vector<1x128xf32>
    %33 = vector.broadcast %32 : vector<1x128xf32> to vector<8x128xf32>
    %34 = arith.addf %31, %33 : vector<8x128xf32>
    %35 = math.sin %34 : vector<8x128xf32>
    %c0_5 = arith.constant 0 : index
    %c0_6 = arith.constant 0 : index
    %36 = vector.load %arg4[%c0_5, %c0_6] : memref<8x128xf32, #tpu.memory_space<vmem>>, vector<8x128xf32>
    tpu.vector_store %arg4[%c0_5, %c0_6], %35 {strides = array<i32>} : memref<8x128xf32, #tpu.memory_space<vmem>>, vector<8x128xf32>,
    return
  }
  func.func @transform_0(%arg0: i32) -> (i32, i32) {
    %c0_i32 = arith.constant 0 : i32
    %c0_i32_0 = arith.constant 0 : i32
    return %arg0, %c0_i32 : i32, i32
  }
  func.func @transform_1(%arg0: i32) -> (i32, i32) {
    %c0_i32 = arith.constant 0 : i32
    %c0_i32_0 = arith.constant 0 : i32
    %c0_i32_1 = arith.constant 0 : i32
    return %c0_i32, %c0_i32_0 : i32, i32
  }
  func.func @transform_2(%arg0: i32) -> (i32, i32) {
    %c0_i32 = arith.constant 0 : i32
    %c0_i32_0 = arith.constant 0 : i32
    %c0_i32_1 = arith.constant 0 : i32
    return %c0_i32, %c0_i32_0 : i32, i32
  }
  func.func @transform_3(%arg0: i32) -> (i32, i32) {
    %c0_i32 = arith.constant 0 : i32
    %c0_i32_0 = arith.constant 0 : i32
    return %arg0, %c0_i32 : i32, i32
  }
}

</mosaic_0001>

<bundles_post_ra>
// kernel: tpu_custom_call.1
= control target key start
LH: loop header
LB: loop body
LE: loop exit
PB: predicated region body
PF: predicated region fallthrough
CT: control target
= control target key end

     0   :  { %v236_v1 = vmov 0   ;;  %v237_v2 = vmov 2   ;;  %s309_s0 = inlined_call_operand.vmem [shape: f32[8,4], index: 0, kind: input, shape index: {}]   ;;  %s310_s1 = inlined_call_operand.vmem [shape: f32[1,128], index: 1, kind: input, shape index: {}]   ;;  %s311_s2 = inlined_call_operand.vmem [shape: f32[1,128], index: 2, kind: input, shape index: {}]   ;;  %s312_s3 = inlined_call_operand.hbm [shape: f32[8,128], index: 3, kind: output, shape index: {}]  }
   0x1   :  { %v15_v0 = vld [vmem:[%s309_s0] sm:$0xff]  ;;  %203 = vset.pattern.permute.xlu0 %v236_v1  ;;  %205 = vset.pattern.permute.xlu1 %v237_v2 }
   0x2   :  { %8 = vsyncpa [#allocation3], 0  ;;  %20 = vperm.xlu0 %203, %v15_v0   ;;  %32 = vperm.xlu1 %205, %v15_v0   ;;  %v238_v3 = vmov 1   ;;  %v239_v4 = vmov 3   ;;  %v16_v5 = vlaneseq  ;;  %v182_v12 = vld [vmem:[%s310_s1] ss:$0 sm:$0xff] }
   0x3   :  { %v183_v14 = vld [vmem:[%s311_s2] ss:$0 sm:$0xff]  ;;  %v240_v28 = vmov 683565275   ;;  %v241_v30 = vmov 2475754826  }
   0x4   :  { %v17_v6 = vand.u32 127, %v16_v5  ;;  %v242_v33 = vmov 2131351028   ;;  %v243_v36 = vmov 2102212464   ;;  %s246_s1 = smov [#allocation2]  }
   0x5   :  { %v244_v39 = vmov 920167782   ;;  %v245_v42 = vmov 1326507024   ;;  %s174_s2 = sshll.u32 %s246_s1, 4  ;;  %s175_s2 = int_to_ptr.vmem [resolvable:$true] %s174_s2 }
   0x6   :  { %204 = vset.pattern.permute.xlu0 %v238_v3  ;;  %206 = vset.pattern.permute.xlu1 %v239_v4  ;;  %vm27_vm0 = vcmp.ge.s32.totalorder %v17_v6, 32  ;;  %vm35_vm1 = vcmp.ge.s32.totalorder %v17_v6, 64  ;;  %vm43_vm2 = vcmp.ge.s32.totalorder %v17_v6, 96  ;;  %s212_s17 = scalar_lea.vmem %s175_s2, 128  ;;  %p217_p1 = scmp.lt.s32.totalorder %s175_s2, %s175_s2 }
   0x7   :  { %24 = vperm.xlu0 %204, %v15_v0   ;;  %40 = vperm.xlu1 %206, %v15_v0   ;;  %p213_p0 = scmp.ne.s32.totalorder %s175_s2, %s212_s17  ;;  %p218_p2 = scmp.lt.s32.totalorder %s212_s17, %s212_s17 }
   0x9   :  { %p219_p3 = por %p218_p2, %p217_p1 }
   0xb   :  { %207 = vset.pattern.permute.xlu0 %v239_v4  ;;  %p220_p4 = pnand %p219_p3, %p213_p0 }
  0x81   :  { %v21_v7 = vpop.permute.xlu0 %20  ;;  %v33_v8 = vpop.permute.xlu1 %32 }
  0x86   :  { %v25_v9 = vpop.permute.xlu0 %24  ;;  %v41_v10 = vpop.permute.xlu1 %40 }
  0x87   :  { %v30_v11 = vsel %vm27_vm0, %v25_v9, %v21_v7 }
  0x88   :  { %v38_v13 = vsel %vm35_vm1, %v33_v8, %v30_v11 }
  0x89   :  { %v46_v15 = vsel %vm43_vm2, %v41_v10, %v38_v13 }
  0x8a   :  { %v54_v16 = vmul.f32 %v182_v12, %v46_v15 }
  0x8c   :  { %v276_v17 = vadd.f32 %v183_v14, %v54_v16 }
  0x8e   :  { %v66_v18 = vand.u32 2139095040, %v276_v17  ;;  %v63_v22 = vand.u32 2147483647, %v276_v17  ;;  %vm65_vm10 = vcmp.lt.s32.totalorder %v276_v17, 0  ;;  %vm155_vm15 = vweird.f32 %v276_v17 }
  0x90   :  { %v67_v19 = vshrl.u32 %v66_v18, 23  ;;  %v70_v26 = vand.u32 8388607, %v63_v22  ;;  %vm64_vm11 = vcmp.le.f32.partialorder %v63_v22, 0.7853982 }
  0x92   :  { %v184_v20 = vadd.s32 4294967169, %v67_v19  ;;  %v71_v44 = vor.u32 8388608, %v70_v26 }
  0x94   :  { %v73_v21 = vadd.s32 1, %v184_v20  ;;  %v111_v58 = vshll.u32 %v71_v44, 8 }
  0x96   :  { %vm74_vm3 = vcmp.gt.s32.totalorder %v73_v21, 0 }
  0x97   :  { %v75_v23 = vsel %vm74_vm3, %v73_v21, 0 }
  0x98   :  { %v77_v24 = vand.u32 31, %v75_v23  ;;  %v76_v27 = vshrl.u32 %v75_v23, 5 }
  0x9a   :  { %v78_v25 = vsub.s32 32, %v77_v24  ;;  %v80_v29 = vshll.u32 %v240_v28, %v77_v24  ;;  %v83_v31 = vshll.u32 %v241_v30, %v77_v24  ;;  %v86_v35 = vshll.u32 %v242_v33, %v77_v24 }
  0x9b   :  { %v89_v38 = vshll.u32 %v243_v36, %v77_v24  ;;  %v92_v41 = vshll.u32 %v244_v39, %v77_v24  ;;  %vm95_vm4 = vcmp.lt.s32.totalorder %v76_v27, 1  ;;  %vm98_vm5 = vcmp.lt.s32.totalorder %v76_v27, 4 }
  0x9c   :  { %v81_v32 = vshrl.u32 %v241_v30, %v78_v25  ;;  %v84_v34 = vshrl.u32 %v242_v33, %v78_v25  ;;  %v87_v37 = vshrl.u32 %v243_v36, %v78_v25  ;;  %v90_v40 = vshrl.u32 %v244_v39, %v78_v25 }
  0x9d   :  { %v93_v43 = vshrl.u32 %v245_v42, %v78_v25  ;;  %v79_v53 = vshrl.u32 %v240_v28, %v78_v25  ;;  %vm97_vm6 = vcmp.lt.s32.totalorder %v76_v27, 3  ;;  %vm96_vm7 = vcmp.lt.s32.totalorder %v76_v27, 2 }
  0x9e   :  { %v82_v45 = vor.u32 %v81_v32, %v80_v29  ;;  %v85_v46 = vor.u32 %v84_v34, %v83_v31  ;;  %v88_v47 = vor.u32 %v87_v37, %v86_v35  ;;  %v91_v48 = vor.u32 %v90_v40, %v89_v38 }
  0x9f   :  { %v94_v49 = vor.u32 %v93_v43, %v92_v41 }
  0xa0   :  { %v100_v50 = vsel %vm98_vm5, %v88_v47, 2102212464  ;;  %v103_v51 = vsel %vm95_vm4, %v82_v45, %v85_v46  ;;  %v107_v52 = vsel %vm95_vm4, %v85_v46, %v88_v47  ;;  %v104_v54 = vsel %vm98_vm5, %v91_v48, 920167782 }
  0xa1   :  { %v108_v55 = vsel %vm98_vm5, %v94_v49, 1326507024  ;;  %v105_v56 = vsel %vm97_vm6, %v88_v47, %v104_v54  ;;  %v99_v59 = vsel %vm95_vm4, %v79_v53, %v82_v45  ;;  %v101_v60 = vsel %vm97_vm6, %v85_v46, %v100_v50 }
  0xa2   :  { %v109_v57 = vsel %vm97_vm6, %v91_v48, %v108_v55  ;;  %v106_v61 = vsel %vm96_vm7, %v103_v51, %v105_v56  ;;  %v102_v3 = vsel %vm96_vm7, %v99_v59, %v101_v60 }
  0xa3   :  { %v110_v62 = vsel %vm96_vm7, %v107_v52, %v109_v57  ;;  %v285_v1 = vmul.u32.u64.low %v111_v58, %v106_v61  ;;  %v286_v2 = vmul.u32.u64.high %v111_v58, %v106_v61, %v285_v1  ;;  %v118_v5 = vmul.u32 %v111_v58, %v102_v3 }
  0xa4   :  { %v282_v63 = vmul.u32.u64.low %v111_v58, %v110_v62  ;;  %v283_v0 = vmul.u32.u64.high %v111_v58, %v110_v62, %v282_v63 }
  0xa5   :  { %v121_v4 = vadd.s32 1, %v286_v2 }
  0xa6   :  { %vm120_vm8 = vc.u32 %v283_v0, %v285_v1  ;;  %v119_v18 = vadd.s32 %v285_v1, %v283_v0 }
  0xa7   :  { %v122_v6 = vsel %vm120_vm8, %v121_v4, %v286_v2 }
  0xa8   :  { %v123_v7 = vadd.s32 %v122_v6, %v118_v5 }
  0xaa   :  { %v124_v8 = vadd.s32 536870912, %v123_v7 }
  0xac   :  { %v125_v9 = vshrl.u32 %v124_v8, 30 }
  0xae   :  { %v126_v10 = vshll.u32 %v125_v9, 30  ;;  %v149_v31 = vsub.s32 4, %v125_v9 }
  0xb0   :  { %v127_v11 = vsub.s32 %v123_v7, %v126_v10  ;;  %v150_v34 = vsel %vm65_vm10, %v149_v31, %v125_v9 }
  0xb1   :  { %v152_v36 = vsel %vm64_vm11, 0, %v150_v34 }
  0xb2   :  { %v129_v12 = vsub.s32 0, %v127_v11  ;;  %v156_v37 = vadd.s32 3, %v152_v36 }
  0xb4   :  { %v185_v13 = vmin.u32 %v129_v12, %v127_v11  ;;  %v157_v38 = vand.u32 3, %v156_v37 }
  0xb6   :  { %v131_v14 = vclz %v185_v13  ;;  %vm162_vm12 = vcmp.eq.s32.totalorder %v157_v38, 2  ;;  %vm159_vm13 = vcmp.eq.s32.totalorder %v157_v38, 0  ;;  %vm158_vm14 = vcmp.lt.s32.totalorder %v157_v38, 2 }
  0xb8   :  { %v186_v15 = vadd.s32 4294967294, %v131_v14 }
  0xba   :  { %vm187_vm9 = vcmp.lt.s32.totalorder %v186_v15, 0 }
  0xbb   :  { %v134_v16 = vsel %vm187_vm9, 0, %v186_v15 }
  0xbc   :  { %v135_v19 = vsub.s32 32, %v134_v16  ;;  %v139_v20 = vsub.s32 4294967266, %v134_v16  ;;  %v136_v21 = vshll.u32 %v127_v11, %v134_v16 }
  0xbe   :  { %v137_v23 = vshrl.u32 %v119_v18, %v135_v19  ;;  %v140_v24 = vadd.s32 127, %v139_v20 }
  0xc0   :  { %v138_v25 = vor.u32 %v137_v23, %v136_v21  ;;  %v141_v26 = vshll.u32 %v140_v24, 23 }
  0xc2   :  { %v142_v27 = vor.u32 4788187, %v141_v26  ;;  %v145_v29 = vcvt.s32.f32 %v138_v25 }
  0xc4   :  { %v143_v28 = vand.u32 2147483647, %v142_v27 }
  0xc6   :  { %v146_v30 = vmul.f32 %v145_v29, %v143_v28 }
  0xc8   :  { %v147_v32 = vxor.u32 2147483648, %v146_v30 }
  0xca   :  { %v148_v33 = vsel %vm65_vm10, %v147_v32, %v146_v30 }
  0xcb   :  { %v151_v35 = vsel %vm64_vm11, %v276_v17, %v148_v33 }
  0xcc   :  { %208 = vcosq.f32 %v151_v35 }
  0xcd   :  { %210 = vsinq.f32 %v151_v35 }
  0xd6   :  { %v209_v39 = vpop.eup %208 }
  0xd7   :  { %v211_v40 = vpop.eup %210  ;;  %v163_v41 = vxor.u32 2147483648, %v209_v39 }
  0xd8   :  { %v160_v42 = vxor.u32 2147483648, %v211_v40 }
  0xd9   :  { %v164_v43 = vsel %vm162_vm12, %v163_v41, %v211_v40 }
  0xda   :  { %v161_v22 = vsel %vm159_vm13, %v209_v39, %v160_v42 }
  0xdb   :  { %v165_v44 = vsel %vm158_vm14, %v161_v22, %v164_v43 }
  0xdc   :  { %v166_v45 = vsel %vm155_vm15, nan, %v165_v44 }
  0xdd   :  { %167 = vst [vmem:[#allocation2] sm:$0xff] %v166_v45 }
  0xde   :  { %223 = shalt.err (!%p220_p4)
}
  0xdf   :  { %s224_s20 = scalar_lea.hbm %s312_s3, 128 }
  0xe0   :  { %p225_p5 = scmp.ne.s32.totalorder %s312_s3, %s224_s20  ;;  %p228_p6 = scmp.lt.u32.totalorder %s224_s20, %s312_s3 }
  0xe2   :  { %p230_p7 = pnand %p228_p6, %p225_p5 }
  0xe4   :  { %233 = shalt.err (!%p230_p7)
}
  0xe5   :  { %177 = dma.vmem_to_hbm [thread:$0]  %s175_s2, 128, %s312_s3, [#allocation3]  }
  0xe6   :  { %234 = dma.done.wait [#allocation3], 128  }
  0xe7   :  { %235 = vsyncadd [#allocation3], 4294967168 }
  0xe8   :  { %181 = vsyncpa [#allocation3], 1 }

</bundles_post_ra>
